<compile_context>
chip_gen: v7x
topology: tpu7x:2x2x1
jax: 0.10.0
libtpu: 0.0.40
codegen_flags: <defaults>
</compile_context>

<pallas_src>
import jax
import jax.numpy as jnp
from jax.experimental import pallas as pl
from jax.experimental.pallas import tpu as pltpu

_LANE = 128
_SUBLANE = 8
_NEG_SLOPE = 0.01  # PyTorch LeakyReLU default


def _round_up(x, m):
    return (x + m - 1) // m * m


def _pad2d(a, rows, cols):
    r, c = a.shape
    return jnp.pad(a, ((0, rows - r), (0, cols - c)))


def _make_ffvae_kernel(n_enc_hidden, n_dec):
    """Kernel closure with a static number of linear layers."""

    def kernel(x_ref, noise_ref, *refs):
        # refs layout:
        #   enc_hidden_w[0..n_enc_hidden), enc_hidden_b[0..n_enc_hidden),
        #   w_heads, b_heads,
        #   dec_w[0..n_dec), dec_b[0..n_dec),
        #   out_ref, kl_ref
        idx = 0
        enc_w = refs[idx:idx + n_enc_hidden]; idx += n_enc_hidden
        enc_b = refs[idx:idx + n_enc_hidden]; idx += n_enc_hidden
        w_heads, b_heads = refs[idx:idx + 2]; idx += 2
        dec_w = refs[idx:idx + n_dec]; idx += n_dec
        dec_b = refs[idx:idx + n_dec]; idx += n_dec
        out_ref = refs[idx]
        kl_ref = refs[idx + 1]

        def leaky(h):
            return jnp.where(h > 0, h, _NEG_SLOPE * h)

        def linear(h_f32, w_ref, b_ref):
            # bf16 operands on the MXU, f32 accumulation, f32 epilogue.
            return jnp.dot(h_f32.astype(jnp.bfloat16), w_ref[...],
                           preferred_element_type=jnp.float32) + b_ref[...]

        # ---- encoder hidden stack (Linear + LeakyReLU) ----
        h = x_ref[...].astype(jnp.float32)
        for i in range(n_enc_hidden):
            h = leaky(linear(h, enc_w[i], enc_b[i]))

        # ---- final encoder layer: one dot produces both heads, split at a
        #      lane-aligned (multiple-of-128) boundary ----
        heads = linear(h, w_heads, b_heads)
        l_pad = heads.shape[1] // 2          # static, multiple of 128
        log_var = heads[:, :l_pad]
        mu = heads[:, l_pad:]

        std = jnp.exp(0.5 * log_var)   # EUP
        var = jnp.exp(log_var)         # EUP (saves the std*std vmul)
        # Per-element KL terms; the 0.5 * sum reduction is done in the wrapper.
        # Padded latent lanes give var=1, mu=0, log_var=0 -> exactly 0.
        kl_ref[...] = var + mu * mu - 1.0 - log_var

        z = mu + std * noise_ref[...].astype(jnp.float32)

        # ---- decoder ----
        h = z
        for i in range(n_dec):
            h = linear(h, dec_w[i], dec_b[i])
            if i < n_dec - 1:
                h = leaky(h)

        out_ref[...] = h.astype(out_ref.dtype)

    return kernel


def ffvae_forward(x, noise, enc_ws, enc_bs, dec_ws, dec_bs, latent_dim,
                  batch_tile=256):
    """Full FFVAE forward in one batch-tiled Pallas call.

    Weights are (in_features, out_features) (transposed vs PyTorch) so the
    kernel computes h @ W + b.  Returns (reconstruction, kl_loss_scalar).
    """
    B, seq_length = x.shape
    n_enc = len(enc_ws)
    n_dec = len(dec_ws)
    n_enc_hidden = n_enc - 1

    f32, bf16 = jnp.float32, jnp.bfloat16

    H = enc_ws[0].shape[1]
    S_pad = _round_up(seq_length, _LANE)
    H_pad = _round_up(H, _LANE)
    L_pad = _round_up(latent_dim, _LANE)
    TB = min(_round_up(B, _SUBLANE), _round_up(batch_tile, _SUBLANE))
    B_pad = _round_up(B, TB)
    n_tiles = B_pad // TB

    # ---- pad + cast operands (zero padding is semantics-preserving) ----
    x_p = _pad2d(x.astype(f32), B_pad, S_pad)
    noise_p = _pad2d(noise.astype(f32), B_pad, L_pad)

    enc_w_p, enc_b_p = [], []
    for i in range(n_enc_hidden):
        in_pad = S_pad if i == 0 else H_pad
        enc_w_p.append(_pad2d(enc_ws[i].astype(f32), in_pad, H_pad).astype(bf16))
        enc_b_p.append(_pad2d(enc_bs[i].astype(f32), 1, H_pad))

    # Final encoder layer -> one lane-aligned head weight:
    #   columns [0, L_pad)        : log_var head (real cols 0..latent)
    #   columns [L_pad, 2*L_pad)  : mu head      (real cols latent..2*latent)
    w_last = enc_ws[-1].astype(f32)
    b_last = enc_bs[-1].astype(f32)
    w_heads = jnp.concatenate(
        [_pad2d(w_last[:, :latent_dim], H_pad, L_pad),
         _pad2d(w_last[:, latent_dim:], H_pad, L_pad)], axis=1).astype(bf16)
    b_heads = jnp.concatenate(
        [_pad2d(b_last[:, :latent_dim], 1, L_pad),
         _pad2d(b_last[:, latent_dim:], 1, L_pad)], axis=1)

    dec_w_p, dec_b_p = [], []
    for i in range(n_dec):
        in_pad = L_pad if i == 0 else H_pad
        out_pad = S_pad if i == n_dec - 1 else H_pad
        dec_w_p.append(_pad2d(dec_ws[i].astype(f32), in_pad, out_pad).astype(bf16))
        dec_b_p.append(_pad2d(dec_bs[i].astype(f32), 1, out_pad))

    params = (enc_w_p + enc_b_p + [w_heads, b_heads] + dec_w_p + dec_b_p)

    # ---- specs ----
    def tiled_spec(feat):
        return pl.BlockSpec((TB, feat), lambda i: (i, 0))

    def resident_spec(arr):
        # Full-extent block, constant index_map -> loaded once, resident in
        # VMEM across every grid step.
        return pl.BlockSpec(arr.shape, lambda i: (0, 0))

    in_specs = ([tiled_spec(S_pad), tiled_spec(L_pad)]
                + [resident_spec(p) for p in params])

    out_shape = (
        jax.ShapeDtypeStruct((B_pad, S_pad), f32),  # padded reconstruction
        jax.ShapeDtypeStruct((B_pad, L_pad), f32),  # per-element KL terms
    )
    out_specs = (tiled_spec(S_pad), tiled_spec(L_pad))

    # ---- explicit VMEM budget (resident weights + double-buffered tiles) ----
    param_bytes = sum(int(p.size) * p.dtype.itemsize for p in params)
    io_bytes = 2 * 2 * TB * (2 * S_pad + 2 * L_pad) * 4   # double-buffered I/O
    act_bytes = 6 * TB * max(H_pad, S_pad, 2 * L_pad) * 4  # live activations
    vmem_limit = min(64 << 20,
                     max(32 << 20,
                         int(1.25 * (param_bytes + io_bytes + act_bytes))
                         + (4 << 20)))

    kernel = _make_ffvae_kernel(n_enc_hidden, n_dec)

    recon_p, kl_terms = pl.pallas_call(
        kernel,
        grid=(n_tiles,),
        out_shape=out_shape,
        in_specs=in_specs,
        out_specs=out_specs,
        compiler_params=pltpu.CompilerParams(
            dimension_semantics=("parallel",),
            vmem_limit_bytes=vmem_limit,
        ),
    )(x_p, noise_p, *params)

    recon = recon_p[:B, :seq_length].astype(x.dtype)
    # Padded latent lanes are exactly 0; only padded batch rows must be dropped.
    kl = 0.5 * jnp.sum(kl_terms[:B, :])
    return recon, kl


def init_ffvae_params(key, latent_dim, seq_length, num_hiddenunits,
                      num_hiddenlayers, dtype=jnp.float32):
    """Deterministic synthetic parameter init (weights stored as (in, out))."""
    def linear(k, fan_in, fan_out):
        kw, kb = jax.random.split(k)
        w = jax.random.normal(kw, (fan_in, fan_out), dtype) * (1.0 / jnp.sqrt(fan_in))
        b = jax.random.normal(kb, (1, fan_out), dtype) * 0.01
        return w, b

    keys = jax.random.split(key, 2 * (num_hiddenlayers + 2))
    ki = iter(keys)

    enc_ws, enc_bs = [], []
    w, b = linear(next(ki), seq_length, num_hiddenunits)
    enc_ws.append(w); enc_bs.append(b)
    for _ in range(num_hiddenlayers):
        w, b = linear(next(ki), num_hiddenunits, num_hiddenunits)
        enc_ws.append(w); enc_bs.append(b)
    w, b = linear(next(ki), num_hiddenunits, 2 * latent_dim)
    enc_ws.append(w); enc_bs.append(b)

    dec_ws, dec_bs = [], []
    w, b = linear(next(ki), latent_dim, num_hiddenunits)
    dec_ws.append(w); dec_bs.append(b)
    for _ in range(num_hiddenlayers):
        w, b = linear(next(ki), num_hiddenunits, num_hiddenunits)
        dec_ws.append(w); dec_bs.append(b)
    w, b = linear(next(ki), num_hiddenunits, seq_length)
    dec_ws.append(w); dec_bs.append(b)

    return enc_ws, enc_bs, dec_ws, dec_bs


def _reference_forward(x, noise, enc_ws, enc_bs, dec_ws, dec_bs, latent_dim):
    """Pure-JAX f32 reference matching the PyTorch module."""
    def leaky(h):
        return jnp.where(h > 0, h, _NEG_SLOPE * h)

    h = x
    for i, (w, b) in enumerate(zip(enc_ws, enc_bs)):
        h = h @ w + b
        if i < len(enc_ws) - 1:
            h = leaky(h)
    log_var = h[:, :latent_dim]
    mu = h[:, latent_dim:]
    std = jnp.exp(0.5 * log_var)
    kl = 0.5 * jnp.sum(std ** 2 + mu ** 2 - 1.0 - log_var)
    z = mu + std * noise
    h = z
    for i, (w, b) in enumerate(zip(dec_ws, dec_bs)):
        h = h @ w + b
        if i < len(dec_ws) - 1:
            h = leaky(h)
    return h, kl


if __name__ == "__main__":
    # Small shapes consistent with the module's forward: x is (batch, seq_length).
    batch = 8
    seq_length = 16
    latent_dim = 4
    num_hiddenunits = 32
    num_hiddenlayers = 2

    key = jax.random.PRNGKey(0)
    k_params, k_x, k_noise = jax.random.split(key, 3)

    enc_ws, enc_bs, dec_ws, dec_bs = init_ffvae_params(
        k_params, latent_dim, seq_length, num_hiddenunits, num_hiddenlayers)

    x = jax.random.normal(k_x, (batch, seq_length), jnp.float32)
    # Reparameterization noise ~ N(0,1), generated outside the kernel
    # (matches torch.randn semantics up to RNG stream).
    noise = jax.random.normal(k_noise, (batch, latent_dim), jnp.float32)

    recon, kl = ffvae_forward(x, noise, enc_ws, enc_bs, dec_ws, dec_bs, latent_dim)
    recon = jax.block_until_ready(recon)
    kl = jax.block_until_ready(kl)

    # Sanity check against the pure-JAX f32 reference (bf16 MXU operands ->
    # loosened tolerances).
    ref_recon, ref_kl = _reference_forward(
        x, noise, enc_ws, enc_bs, dec_ws, dec_bs, latent_dim)
    assert recon.shape == (batch, seq_length)
    assert jnp.allclose(recon, ref_recon, atol=7.5e-2, rtol=7.5e-2), (
        float(jnp.max(jnp.abs(recon - ref_recon))))
    assert jnp.allclose(kl, ref_kl, atol=1.0, rtol=5e-2), (float(kl), float(ref_kl))

    print("KERNEL_OK")
</pallas_src>

<mosaic_0001>
module attributes {stable_mosaic.version = 11 : i64} {
  func.func @kernel(%arg0: i32, %arg1: memref<8x128xf32, #tpu.memory_space<vmem>>, %arg2: memref<8x128xf32, #tpu.memory_space<vmem>>, %arg3: memref<128x128xbf16, #tpu.memory_space<vmem>>, %arg4: memref<128x128xbf16, #tpu.memory_space<vmem>>, %arg5: memref<128x128xbf16, #tpu.memory_space<vmem>>, %arg6: memref<1x128xf32, #tpu.memory_space<vmem>>, %arg7: memref<1x128xf32, #tpu.memory_space<vmem>>, %arg8: memref<1x128xf32, #tpu.memory_space<vmem>>, %arg9: memref<128x256xbf16, #tpu.memory_space<vmem>>, %arg10: memref<1x256xf32, #tpu.memory_space<vmem>>, %arg11: memref<128x128xbf16, #tpu.memory_space<vmem>>, %arg12: memref<128x128xbf16, #tpu.memory_space<vmem>>, %arg13: memref<128x128xbf16, #tpu.memory_space<vmem>>, %arg14: memref<128x128xbf16, #tpu.memory_space<vmem>>, %arg15: memref<1x128xf32, #tpu.memory_space<vmem>>, %arg16: memref<1x128xf32, #tpu.memory_space<vmem>>, %arg17: memref<1x128xf32, #tpu.memory_space<vmem>>, %arg18: memref<1x128xf32, #tpu.memory_space<vmem>>, %arg19: memref<8x128xf32, #tpu.memory_space<vmem>>, %arg20: memref<8x128xf32, #tpu.memory_space<vmem>>) attributes {dimension_semantics = [#tpu.dimension_semantics<parallel>], iteration_bounds = array<i64: 1>, scalar_prefetch = 0 : i64, scratch_operands = 0 : i64, tpu.core_type = #tpu.core_type<tc>, window_params = [{transform_indices = @transform_0, window_bounds = array<i64: 8, 128>}, {transform_indices = @transform_1, window_bounds = array<i64: 8, 128>}, {pipeline_mode = #tpu.pipeline_mode<synchronous>, transform_indices = @transform_2, window_bounds = array<i64: 128, 128>}, {pipeline_mode = #tpu.pipeline_mode<synchronous>, transform_indices = @transform_3, window_bounds = array<i64: 128, 128>}, {pipeline_mode = #tpu.pipeline_mode<synchronous>, transform_indices = @transform_4, window_bounds = array<i64: 128, 128>}, {pipeline_mode = #tpu.pipeline_mode<synchronous>, transform_indices = @transform_5, window_bounds = array<i64: 1, 128>}, {pipeline_mode = #tpu.pipeline_mode<synchronous>, transform_indices = @transform_6, window_bounds = array<i64: 1, 128>}, {pipeline_mode = #tpu.pipeline_mode<synchronous>, transform_indices = @transform_7, window_bounds = array<i64: 1, 128>}, {pipeline_mode = #tpu.pipeline_mode<synchronous>, transform_indices = @transform_8, window_bounds = array<i64: 128, 256>}, {pipeline_mode = #tpu.pipeline_mode<synchronous>, transform_indices = @transform_9, window_bounds = array<i64: 1, 256>}, {pipeline_mode = #tpu.pipeline_mode<synchronous>, transform_indices = @transform_10, window_bounds = array<i64: 128, 128>}, {pipeline_mode = #tpu.pipeline_mode<synchronous>, transform_indices = @transform_11, window_bounds = array<i64: 128, 128>}, {pipeline_mode = #tpu.pipeline_mode<synchronous>, transform_indices = @transform_12, window_bounds = array<i64: 128, 128>}, {pipeline_mode = #tpu.pipeline_mode<synchronous>, transform_indices = @transform_13, window_bounds = array<i64: 128, 128>}, {pipeline_mode = #tpu.pipeline_mode<synchronous>, transform_indices = @transform_14, window_bounds = array<i64: 1, 128>}, {pipeline_mode = #tpu.pipeline_mode<synchronous>, transform_indices = @transform_15, window_bounds = array<i64: 1, 128>}, {pipeline_mode = #tpu.pipeline_mode<synchronous>, transform_indices = @transform_16, window_bounds = array<i64: 1, 128>}, {pipeline_mode = #tpu.pipeline_mode<synchronous>, transform_indices = @transform_17, window_bounds = array<i64: 1, 128>}, {transform_indices = @transform_18, window_bounds = array<i64: 8, 128>}, {transform_indices = @transform_19, window_bounds = array<i64: 8, 128>}]} {
    %c0 = arith.constant 0 : index
    %c0_0 = arith.constant 0 : index
    %0 = vector.load %arg1[%c0, %c0_0] : memref<8x128xf32, #tpu.memory_space<vmem>>, vector<8x128xf32>
    %1 = arith.truncf %0 : vector<8x128xf32> to vector<8x128xbf16>
    %c0_1 = arith.constant 0 : index
    %c0_2 = arith.constant 0 : index
    %2 = vector.load %arg3[%c0_1, %c0_2] : memref<128x128xbf16, #tpu.memory_space<vmem>>, vector<128x128xbf16>
    %cst = arith.constant dense<0.000000e+00> : vector<8x128xf32>
    %3 = tpu.matmul %1, %2, %cst {dimension_numbers = #tpu.dot_dimension_numbers<[1], [0], [0], [1], [0, 0, 1, 1], [], []>} : vector<8x128xbf16>, vector<128x128xbf16>, vector<8x128xf32> -> vector<8x128xf32>
    %c0_3 = arith.constant 0 : index
    %c0_4 = arith.constant 0 : index
    %4 = vector.load %arg6[%c0_3, %c0_4] : memref<1x128xf32, #tpu.memory_space<vmem>>, vector<1x128xf32>
    %5 = vector.broadcast %4 : vector<1x128xf32> to vector<8x128xf32>
    %6 = arith.addf %3, %5 : vector<8x128xf32>
    %cst_5 = arith.constant 0.000000e+00 : f32
    %7 = vector.broadcast %cst_5 : f32 to vector<8x128xf32>
    %8 = arith.cmpf ogt, %6, %7 : vector<8x128xf32>
    %cst_6 = arith.constant 0.00999999977 : f32
    %9 = vector.broadcast %cst_6 : f32 to vector<8x128xf32>
    %10 = arith.mulf %9, %6 : vector<8x128xf32>
    %11 = arith.select %8, %6, %10 : vector<8x128xi1>, vector<8x128xf32>
    %12 = arith.truncf %11 : vector<8x128xf32> to vector<8x128xbf16>
    %c0_7 = arith.constant 0 : index
    %c0_8 = arith.constant 0 : index
    %13 = vector.load %arg4[%c0_7, %c0_8] : memref<128x128xbf16, #tpu.memory_space<vmem>>, vector<128x128xbf16>
    %cst_9 = arith.constant dense<0.000000e+00> : vector<8x128xf32>
    %14 = tpu.matmul %12, %13, %cst_9 {dimension_numbers = #tpu.dot_dimension_numbers<[1], [0], [0], [1], [0, 0, 1, 1], [], []>} : vector<8x128xbf16>, vector<128x128xbf16>, vector<8x128xf32> -> vector<8x128xf32>
    %c0_10 = arith.constant 0 : index
    %c0_11 = arith.constant 0 : index
    %15 = vector.load %arg7[%c0_10, %c0_11] : memref<1x128xf32, #tpu.memory_space<vmem>>, vector<1x128xf32>
    %16 = vector.broadcast %15 : vector<1x128xf32> to vector<8x128xf32>
    %17 = arith.addf %14, %16 : vector<8x128xf32>
    %cst_12 = arith.constant 0.000000e+00 : f32
    %18 = vector.broadcast %cst_12 : f32 to vector<8x128xf32>
    %19 = arith.cmpf ogt, %17, %18 : vector<8x128xf32>
    %cst_13 = arith.constant 0.00999999977 : f32
    %20 = vector.broadcast %cst_13 : f32 to vector<8x128xf32>
    %21 = arith.mulf %20, %17 : vector<8x128xf32>
    %22 = arith.select %19, %17, %21 : vector<8x128xi1>, vector<8x128xf32>
    %23 = arith.truncf %22 : vector<8x128xf32> to vector<8x128xbf16>
    %c0_14 = arith.constant 0 : index
    %c0_15 = arith.constant 0 : index
    %24 = vector.load %arg5[%c0_14, %c0_15] : memref<128x128xbf16, #tpu.memory_space<vmem>>, vector<128x128xbf16>
    %cst_16 = arith.constant dense<0.000000e+00> : vector<8x128xf32>
    %25 = tpu.matmul %23, %24, %cst_16 {dimension_numbers = #tpu.dot_dimension_numbers<[1], [0], [0], [1], [0, 0, 1, 1], [], []>} : vector<8x128xbf16>, vector<128x128xbf16>, vector<8x128xf32> -> vector<8x128xf32>
    %c0_17 = arith.constant 0 : index
    %c0_18 = arith.constant 0 : index
    %26 = vector.load %arg8[%c0_17, %c0_18] : memref<1x128xf32, #tpu.memory_space<vmem>>, vector<1x128xf32>
    %27 = vector.broadcast %26 : vector<1x128xf32> to vector<8x128xf32>
    %28 = arith.addf %25, %27 : vector<8x128xf32>
    %cst_19 = arith.constant 0.000000e+00 : f32
    %29 = vector.broadcast %cst_19 : f32 to vector<8x128xf32>
    %30 = arith.cmpf ogt, %28, %29 : vector<8x128xf32>
    %cst_20 = arith.constant 0.00999999977 : f32
    %31 = vector.broadcast %cst_20 : f32 to vector<8x128xf32>
    %32 = arith.mulf %31, %28 : vector<8x128xf32>
    %33 = arith.select %30, %28, %32 : vector<8x128xi1>, vector<8x128xf32>
    %34 = arith.truncf %33 : vector<8x128xf32> to vector<8x128xbf16>
    %c0_21 = arith.constant 0 : index
    %c0_22 = arith.constant 0 : index
    %35 = vector.load %arg9[%c0_21, %c0_22] : memref<128x256xbf16, #tpu.memory_space<vmem>>, vector<128x256xbf16>
    %cst_23 = arith.constant dense<0.000000e+00> : vector<8x256xf32>
    %36 = tpu.matmul %34, %35, %cst_23 {dimension_numbers = #tpu.dot_dimension_numbers<[1], [0], [0], [1], [0, 0, 1, 1], [], []>} : vector<8x128xbf16>, vector<128x256xbf16>, vector<8x256xf32> -> vector<8x256xf32>
    %c0_24 = arith.constant 0 : index
    %c0_25 = arith.constant 0 : index
    %37 = vector.load %arg10[%c0_24, %c0_25] : memref<1x256xf32, #tpu.memory_space<vmem>>, vector<1x256xf32>
    %38 = vector.broadcast %37 : vector<1x256xf32> to vector<8x256xf32>
    %39 = arith.addf %36, %38 : vector<8x256xf32>
    %40 = vector.extract_strided_slice %39 {offsets = [0, 0], sizes = [8, 128], strides = [1, 1]} : vector<8x256xf32> to vector<8x128xf32>
    %41 = vector.extract_strided_slice %39 {offsets = [0, 128], sizes = [8, 128], strides = [1, 1]} : vector<8x256xf32> to vector<8x128xf32>
    %cst_26 = arith.constant 5.000000e-01 : f32
    %42 = vector.broadcast %cst_26 : f32 to vector<8x128xf32>
    %43 = arith.mulf %42, %40 : vector<8x128xf32>
    %44 = math.exp %43 : vector<8x128xf32>
    %45 = math.exp %40 : vector<8x128xf32>
    %46 = arith.mulf %41, %41 : vector<8x128xf32>
    %47 = arith.addf %45, %46 : vector<8x128xf32>
    %cst_27 = arith.constant 1.000000e+00 : f32
    %48 = vector.broadcast %cst_27 : f32 to vector<8x128xf32>
    %49 = arith.subf %47, %48 : vector<8x128xf32>
    %50 = arith.subf %49, %40 : vector<8x128xf32>
    %c0_28 = arith.constant 0 : index
    %c0_29 = arith.constant 0 : index
    %51 = vector.load %arg20[%c0_28, %c0_29] : memref<8x128xf32, #tpu.memory_space<vmem>>, vector<8x128xf32>
    tpu.vector_store %arg20[%c0_28, %c0_29], %50 {strides = array<i32>} : memref<8x128xf32, #tpu.memory_space<vmem>>, vector<8x128xf32>,
    %c0_30 = arith.constant 0 : index
    %c0_31 = arith.constant 0 : index
    %52 = vector.load %arg2[%c0_30, %c0_31] : memref<8x128xf32, #tpu.memory_space<vmem>>, vector<8x128xf32>
    %53 = arith.mulf %44, %52 : vector<8x128xf32>
    %54 = arith.addf %41, %53 : vector<8x128xf32>
    %55 = arith.truncf %54 : vector<8x128xf32> to vector<8x128xbf16>
    %c0_32 = arith.constant 0 : index
    %c0_33 = arith.constant 0 : index
    %56 = vector.load %arg11[%c0_32, %c0_33] : memref<128x128xbf16, #tpu.memory_space<vmem>>, vector<128x128xbf16>
    %cst_34 = arith.constant dense<0.000000e+00> : vector<8x128xf32>
    %57 = tpu.matmul %55, %56, %cst_34 {dimension_numbers = #tpu.dot_dimension_numbers<[1], [0], [0], [1], [0, 0, 1, 1], [], []>} : vector<8x128xbf16>, vector<128x128xbf16>, vector<8x128xf32> -> vector<8x128xf32>
    %c0_35 = arith.constant 0 : index
    %c0_36 = arith.constant 0 : index
    %58 = vector.load %arg15[%c0_35, %c0_36] : memref<1x128xf32, #tpu.memory_space<vmem>>, vector<1x128xf32>
    %59 = vector.broadcast %58 : vector<1x128xf32> to vector<8x128xf32>
    %60 = arith.addf %57, %59 : vector<8x128xf32>
    %cst_37 = arith.constant 0.000000e+00 : f32
    %61 = vector.broadcast %cst_37 : f32 to vector<8x128xf32>
    %62 = arith.cmpf ogt, %60, %61 : vector<8x128xf32>
    %cst_38 = arith.constant 0.00999999977 : f32
    %63 = vector.broadcast %cst_38 : f32 to vector<8x128xf32>
    %64 = arith.mulf %63, %60 : vector<8x128xf32>
    %65 = arith.select %62, %60, %64 : vector<8x128xi1>, vector<8x128xf32>
    %66 = arith.truncf %65 : vector<8x128xf32> to vector<8x128xbf16>
    %c0_39 = arith.constant 0 : index
    %c0_40 = arith.constant 0 : index
    %67 = vector.load %arg12[%c0_39, %c0_40] : memref<128x128xbf16, #tpu.memory_space<vmem>>, vector<128x128xbf16>
    %cst_41 = arith.constant dense<0.000000e+00> : vector<8x128xf32>
    %68 = tpu.matmul %66, %67, %cst_41 {dimension_numbers = #tpu.dot_dimension_numbers<[1], [0], [0], [1], [0, 0, 1, 1], [], []>} : vector<8x128xbf16>, vector<128x128xbf16>, vector<8x128xf32> -> vector<8x128xf32>
    %c0_42 = arith.constant 0 : index
    %c0_43 = arith.constant 0 : index
    %69 = vector.load %arg16[%c0_42, %c0_43] : memref<1x128xf32, #tpu.memory_space<vmem>>, vector<1x128xf32>
    %70 = vector.broadcast %69 : vector<1x128xf32> to vector<8x128xf32>
    %71 = arith.addf %68, %70 : vector<8x128xf32>
    %cst_44 = arith.constant 0.000000e+00 : f32
    %72 = vector.broadcast %cst_44 : f32 to vector<8x128xf32>
    %73 = arith.cmpf ogt, %71, %72 : vector<8x128xf32>
    %cst_45 = arith.constant 0.00999999977 : f32
    %74 = vector.broadcast %cst_45 : f32 to vector<8x128xf32>
    %75 = arith.mulf %74, %71 : vector<8x128xf32>
    %76 = arith.select %73, %71, %75 : vector<8x128xi1>, vector<8x128xf32>
    %77 = arith.truncf %76 : vector<8x128xf32> to vector<8x128xbf16>
    %c0_46 = arith.constant 0 : index
    %c0_47 = arith.constant 0 : index
    %78 = vector.load %arg13[%c0_46, %c0_47] : memref<128x128xbf16, #tpu.memory_space<vmem>>, vector<128x128xbf16>
    %cst_48 = arith.constant dense<0.000000e+00> : vector<8x128xf32>
    %79 = tpu.matmul %77, %78, %cst_48 {dimension_numbers = #tpu.dot_dimension_numbers<[1], [0], [0], [1], [0, 0, 1, 1], [], []>} : vector<8x128xbf16>, vector<128x128xbf16>, vector<8x128xf32> -> vector<8x128xf32>
    %c0_49 = arith.constant 0 : index
    %c0_50 = arith.constant 0 : index
    %80 = vector.load %arg17[%c0_49, %c0_50] : memref<1x128xf32, #tpu.memory_space<vmem>>, vector<1x128xf32>
    %81 = vector.broadcast %80 : vector<1x128xf32> to vector<8x128xf32>
    %82 = arith.addf %79, %81 : vector<8x128xf32>
    %cst_51 = arith.constant 0.000000e+00 : f32
    %83 = vector.broadcast %cst_51 : f32 to vector<8x128xf32>
    %84 = arith.cmpf ogt, %82, %83 : vector<8x128xf32>
    %cst_52 = arith.constant 0.00999999977 : f32
    %85 = vector.broadcast %cst_52 : f32 to vector<8x128xf32>
    %86 = arith.mulf %85, %82 : vector<8x128xf32>
    %87 = arith.select %84, %82, %86 : vector<8x128xi1>, vector<8x128xf32>
    %88 = arith.truncf %87 : vector<8x128xf32> to vector<8x128xbf16>
    %c0_53 = arith.constant 0 : index
    %c0_54 = arith.constant 0 : index
    %89 = vector.load %arg14[%c0_53, %c0_54] : memref<128x128xbf16, #tpu.memory_space<vmem>>, vector<128x128xbf16>
    %cst_55 = arith.constant dense<0.000000e+00> : vector<8x128xf32>
    %90 = tpu.matmul %88, %89, %cst_55 {dimension_numbers = #tpu.dot_dimension_numbers<[1], [0], [0], [1], [0, 0, 1, 1], [], []>} : vector<8x128xbf16>, vector<128x128xbf16>, vector<8x128xf32> -> vector<8x128xf32>
    %c0_56 = arith.constant 0 : index
    %c0_57 = arith.constant 0 : index
    %91 = vector.load %arg18[%c0_56, %c0_57] : memref<1x128xf32, #tpu.memory_space<vmem>>, vector<1x128xf32>
    %92 = vector.broadcast %91 : vector<1x128xf32> to vector<8x128xf32>
    %93 = arith.addf %90, %92 : vector<8x128xf32>
    %c0_58 = arith.constant 0 : index
    %c0_59 = arith.constant 0 : index
    %94 = vector.load %arg19[%c0_58, %c0_59] : memref<8x128xf32, #tpu.memory_space<vmem>>, vector<8x128xf32>
    tpu.vector_store %arg19[%c0_58, %c0_59], %93 {strides = array<i32>} : memref<8x128xf32, #tpu.memory_space<vmem>>, vector<8x128xf32>,
    return
  }
  func.func @transform_0(%arg0: i32) -> (i32, i32) {
    %c0_i32 = arith.constant 0 : i32
    %c0_i32_0 = arith.constant 0 : i32
    return %arg0, %c0_i32 : i32, i32
  }
  func.func @transform_1(%arg0: i32) -> (i32, i32) {
    %c0_i32 = arith.constant 0 : i32
    %c0_i32_0 = arith.constant 0 : i32
    return %arg0, %c0_i32 : i32, i32
  }
  func.func @transform_2(%arg0: i32) -> (i32, i32) {
    %c0_i32 = arith.constant 0 : i32
    %c0_i32_0 = arith.constant 0 : i32
    %c0_i32_1 = arith.constant 0 : i32
    return %c0_i32, %c0_i32_0 : i32, i32
  }
  func.func @transform_3(%arg0: i32) -> (i32, i32) {
    %c0_i32 = arith.constant 0 : i32
    %c0_i32_0 = arith.constant 0 : i32
    %c0_i32_1 = arith.constant 0 : i32
    return %c0_i32, %c0_i32_0 : i32, i32
  }
  func.func @transform_4(%arg0: i32) -> (i32, i32) {
    %c0_i32 = arith.constant 0 : i32
    %c0_i32_0 = arith.constant 0 : i32
    %c0_i32_1 = arith.constant 0 : i32
    return %c0_i32, %c0_i32_0 : i32, i32
  }
  func.func @transform_5(%arg0: i32) -> (i32, i32) {
    %c0_i32 = arith.constant 0 : i32
    %c0_i32_0 = arith.constant 0 : i32
    %c0_i32_1 = arith.constant 0 : i32
    return %c0_i32, %c0_i32_0 : i32, i32
  }
  func.func @transform_6(%arg0: i32) -> (i32, i32) {
    %c0_i32 = arith.constant 0 : i32
    %c0_i32_0 = arith.constant 0 : i32
    %c0_i32_1 = arith.constant 0 : i32
    return %c0_i32, %c0_i32_0 : i32, i32
  }
  func.func @transform_7(%arg0: i32) -> (i32, i32) {
    %c0_i32 = arith.constant 0 : i32
    %c0_i32_0 = arith.constant 0 : i32
    %c0_i32_1 = arith.constant 0 : i32
    return %c0_i32, %c0_i32_0 : i32, i32
  }
  func.func @transform_8(%arg0: i32) -> (i32, i32) {
    %c0_i32 = arith.constant 0 : i32
    %c0_i32_0 = arith.constant 0 : i32
    %c0_i32_1 = arith.constant 0 : i32
    return %c0_i32, %c0_i32_0 : i32, i32
  }
  func.func @transform_9(%arg0: i32) -> (i32, i32) {
    %c0_i32 = arith.constant 0 : i32
    %c0_i32_0 = arith.constant 0 : i32
    %c0_i32_1 = arith.constant 0 : i32
    return %c0_i32, %c0_i32_0 : i32, i32
  }
  func.func @transform_10(%arg0: i32) -> (i32, i32) {
    %c0_i32 = arith.constant 0 : i32
    %c0_i32_0 = arith.constant 0 : i32
    %c0_i32_1 = arith.constant 0 : i32
    return %c0_i32, %c0_i32_0 : i32, i32
  }
  func.func @transform_11(%arg0: i32) -> (i32, i32) {
    %c0_i32 = arith.constant 0 : i32
    %c0_i32_0 = arith.constant 0 : i32
    %c0_i32_1 = arith.constant 0 : i32
    return %c0_i32, %c0_i32_0 : i32, i32
  }
  func.func @transform_12(%arg0: i32) -> (i32, i32) {
    %c0_i32 = arith.constant 0 : i32
    %c0_i32_0 = arith.constant 0 : i32
    %c0_i32_1 = arith.constant 0 : i32
    return %c0_i32, %c0_i32_0 : i32, i32
  }
  func.func @transform_13(%arg0: i32) -> (i32, i32) {
    %c0_i32 = arith.constant 0 : i32
    %c0_i32_0 = arith.constant 0 : i32
    %c0_i32_1 = arith.constant 0 : i32
    return %c0_i32, %c0_i32_0 : i32, i32
  }
  func.func @transform_14(%arg0: i32) -> (i32, i32) {
    %c0_i32 = arith.constant 0 : i32
    %c0_i32_0 = arith.constant 0 : i32
    %c0_i32_1 = arith.constant 0 : i32
    return %c0_i32, %c0_i32_0 : i32, i32
  }
  func.func @transform_15(%arg0: i32) -> (i32, i32) {
    %c0_i32 = arith.constant 0 : i32
    %c0_i32_0 = arith.constant 0 : i32
    %c0_i32_1 = arith.constant 0 : i32
    return %c0_i32, %c0_i32_0 : i32, i32
  }
  func.func @transform_16(%arg0: i32) -> (i32, i32) {
    %c0_i32 = arith.constant 0 : i32
    %c0_i32_0 = arith.constant 0 : i32
    %c0_i32_1 = arith.constant 0 : i32
    return %c0_i32, %c0_i32_0 : i32, i32
  }
  func.func @transform_17(%arg0: i32) -> (i32, i32) {
    %c0_i32 = arith.constant 0 : i32
    %c0_i32_0 = arith.constant 0 : i32
    %c0_i32_1 = arith.constant 0 : i32
    return %c0_i32, %c0_i32_0 : i32, i32
  }
  func.func @transform_18(%arg0: i32) -> (i32, i32) {
    %c0_i32 = arith.constant 0 : i32
    %c0_i32_0 = arith.constant 0 : i32
    return %arg0, %c0_i32 : i32, i32
  }
  func.func @transform_19(%arg0: i32) -> (i32, i32) {
    %c0_i32 = arith.constant 0 : i32
    %c0_i32_0 = arith.constant 0 : i32
    return %arg0, %c0_i32 : i32, i32
  }
}

</mosaic_0001>

<bundles_post_ra>
// kernel: tpu_custom_call.1
= control target key start
LH: loop header
LB: loop body
LE: loop exit
PB: predicated region body
PF: predicated region fallthrough
CT: control target
= control target key end

     0   :  { %s2241_s0 = inlined_call_operand.hbm [shape: f32[8,128], index: 0, kind: input, shape index: {}]   ;;  %s2242_s1 = inlined_call_operand.hbm [shape: f32[8,128], index: 1, kind: input, shape index: {}]   ;;  %s2243_s2 = inlined_call_operand.hbm [shape: bf16[128,128], index: 2, kind: input, shape index: {}]   ;;  %s2244_s3 = inlined_call_operand.hbm [shape: bf16[128,128], index: 3, kind: input, shape index: {}]   ;;  %s2245_s4 = inlined_call_operand.hbm [shape: bf16[128,128], index: 4, kind: input, shape index: {}]   ;;  %s2246_s5 = inlined_call_operand.vmem [shape: f32[1,128], index: 5, kind: input, shape index: {}]   ;;  %s2247_s6 = inlined_call_operand.vmem [shape: f32[1,128], index: 6, kind: input, shape index: {}]   ;;  %s2248_s7 = inlined_call_operand.vmem [shape: f32[1,128], index: 7, kind: input, shape index: {}]   ;;  %s2249_s8 = inlined_call_operand.hbm [shape: bf16[128,256], index: 8, kind: input, shape index: {}]   ;;  %s2250_s9 = inlined_call_operand.vmem [shape: f32[1,256], index: 9, kind: input, shape index: {}]   ;;  %s2251_s10 = inlined_call_operand.hbm [shape: bf16[128,128], index: 10, kind: input, shape index: {}]   ;;  %s2252_s11 = inlined_call_operand.hbm [shape: bf16[128,128], index: 11, kind: input, shape index: {}]   ;;  %s2253_s12 = inlined_call_operand.hbm [shape: bf16[128,128], index: 12, kind: input, shape index: {}]   ;;  %s2254_s13 = inlined_call_operand.hbm [shape: bf16[128,128], index: 13, kind: input, shape index: {}]   ;;  %s2255_s14 = inlined_call_operand.vmem [shape: f32[1,128], index: 14, kind: input, shape index: {}]   ;;  %s2256_s15 = inlined_call_operand.vmem [shape: f32[1,128], index: 15, kind: input, shape index: {}]   ;;  %s2257_s16 = inlined_call_operand.vmem [shape: f32[1,128], index: 16, kind: input, shape index: {}]   ;;  %s2258_s17 = inlined_call_operand.vmem [shape: f32[1,128], index: 17, kind: input, shape index: {}]   ;;  %s2259_s18 = inlined_call_operand.hbm [shape: f32[8,128], index: 18, kind: output, shape index: {0}]   ;;  %s2260_s19 = inlined_call_operand.hbm [shape: f32[8,128], index: 19, kind: output, shape index: {1}]  }
   0x1   :  { %2270 = sst [smem:[#allocation30_spill]] %s2241_s0 }
   0x2   :  { %2271 = sst [smem:[#allocation31_spill]] %s2242_s1 }
   0x3   :  { %2272 = sst [smem:[#allocation32_spill]] %s2243_s2 }
   0x4   :  { %2273 = sst [smem:[#allocation33_spill]] %s2244_s3 }
   0x5   :  { %2274 = sst [smem:[#allocation34_spill]] %s2259_s18 }
   0x6   :  { %25 = vsyncpa [#allocation3], 0 }
   0x7   :  { %26 = vsyncpa [#allocation6], 0 }
   0x8   :  { %27 = vsyncpa [#allocation9], 0 }
   0x9   :  { %28 = vsyncpa [#allocation12], 0 }
   0xa   :  { %29 = vsyncpa [#allocation15], 0 }
   0xb   :  { %30 = vsyncpa [#allocation18], 0 }
   0xc   :  { %31 = vsyncpa [#allocation4], 0 }
   0xd   :  { %32 = vsyncpa [#allocation21], 0  ;;  %s1863_s0 = smov [#allocation5]   ;;  %s2275_s1 = sld [smem:[#allocation31_spill]] }
   0xe   :  { %s49_s30 = sshll.u32 %s1863_s0, 4  ;;  %s50_s30 = int_to_ptr.vmem [resolvable:$true] %s49_s30 }
  0x13   :  { %s1583_s22 = scalar_lea.hbm %s2275_s1, 128 }
  0x14   :  { %p1584_p0 = scmp.ne.s32.totalorder %s2275_s1, %s1583_s22  ;;  %p1587_p1 = scmp.lt.u32.totalorder %s1583_s22, %s2275_s1 }
  0x16   :  { %p1589_p2 = pnand %p1587_p1, %p1584_p0 }
  0x18   :  { %1592 = shalt.err (!%p1589_p2)
}
  0x19   :  { %s1593_s3 = scalar_lea.vmem %s50_s30, 128  ;;  %p1598_p4 = scmp.lt.s32.totalorder %s50_s30, %s50_s30 }
  0x1a   :  { %p1594_p3 = scmp.ne.s32.totalorder %s50_s30, %s1593_s3  ;;  %p1599_p5 = scmp.lt.s32.totalorder %s1593_s3, %s1593_s3 }
  0x1c   :  { %p1600_p6 = por %p1599_p5, %p1598_p4 }
  0x1e   :  { %p1601_p7 = pnand %p1600_p6, %p1594_p3 }
  0x20   :  { %1604 = shalt.err (!%p1601_p7)
}
  0x21   :  { %52 = dma.hbm_to_vmem [thread:$0]  %s2275_s1, 128, %s50_s30, [#allocation6]  }
  0x22   :  { %s1864_s28 = smov [#allocation8]   ;;  %s1865_s0 = smov [#allocation11]  }
  0x23   :  { %s70_s29 = sshll.u32 %s1864_s28, 4  ;;  %s100_s20 = sshll.u32 %s1865_s0, 4  ;;  %s71_s29 = int_to_ptr.vmem [resolvable:$true] %s70_s29  ;;  %s101_s20 = int_to_ptr.vmem [resolvable:$true] %s100_s20 }
  0x24   :  { %s2276_s2 = sld [smem:[#allocation33_spill]] }
  0x2a   :  { %s1605_s23 = scalar_lea.hbm %s2276_s2, 1024 }
  0x2b   :  { %p1606_p8 = scmp.ne.s32.totalorder %s2276_s2, %s1605_s23  ;;  %p1609_p9 = scmp.lt.u32.totalorder %s1605_s23, %s2276_s2 }
  0x2d   :  { %p1611_p10 = pnand %p1609_p9, %p1606_p8 }
  0x2f   :  { %1614 = shalt.err (!%p1611_p10)
}
  0x30   :  { %s1615_s30 = scalar_lea.vmem %s71_s29, 1024  ;;  %p1620_p12 = scmp.lt.s32.totalorder %s71_s29, %s71_s29 }
  0x31   :  { %p1616_p11 = scmp.ne.s32.totalorder %s71_s29, %s1615_s30  ;;  %p1621_p13 = scmp.lt.s32.totalorder %s1615_s30, %s1615_s30 }
  0x33   :  { %p1622_p0 = por %p1621_p13, %p1620_p12 }
  0x35   :  { %p1623_p1 = pnand %p1622_p0, %p1616_p11 }
  0x37   :  { %1626 = shalt.err (!%p1623_p1)
}
  0x38   :  { %s2266_s1 = smov 64   ;;  %s2268_s26 = smov 4  }
  0x39   :  { %76 = dma.hbm_to_vmem [thread:$0]  %s2276_s2, 1024, %s71_s29, [#allocation9], %s2266_s1, %s2266_s1, %s2268_s26  }
  0x3a   :  { %s1627_s21 = scalar_lea.hbm %s2249_s8, 2048 }
  0x3b   :  { %p1628_p2 = scmp.ne.s32.totalorder %s2249_s8, %s1627_s21  ;;  %p1631_p3 = scmp.lt.u32.totalorder %s1627_s21, %s2249_s8 }
  0x3d   :  { %p1633_p4 = pnand %p1631_p3, %p1628_p2 }
  0x3f   :  { %1636 = shalt.err (!%p1633_p4)
}
  0x40   :  { %s1637_s3 = scalar_lea.vmem %s101_s20, 2048  ;;  %p1642_p6 = scmp.lt.s32.totalorder %s101_s20, %s101_s20 }
  0x41   :  { %p1638_p5 = scmp.ne.s32.totalorder %s101_s20, %s1637_s3  ;;  %p1643_p7 = scmp.lt.s32.totalorder %s1637_s3, %s1637_s3 }
  0x43   :  { %p1644_p8 = por %p1643_p7, %p1642_p6 }
  0x45   :  { %p1645_p9 = pnand %p1644_p8, %p1638_p5 }
  0x47   :  { %1648 = shalt.err (!%p1645_p9)
}
  0x48   :  { %s1868_s29 = smov 128   ;;  %s1869_s2 = smov 8  }
  0x49   :  { %106 = dma.hbm_to_vmem [thread:$0]  %s2249_s8, 2048, %s101_s20, [#allocation12], %s1868_s29, %s1868_s29, %s1869_s2  }
  0x4a   :  { %s1870_s28 = smov [#allocation14]   ;;  %s1871_s0 = smov [#allocation2]  }
  0x4b   :  { %s126_s18 = sshll.u32 %s1870_s28, 4  ;;  %s39_s21 = sshll.u32 %s1871_s0, 4  ;;  %s127_s18 = int_to_ptr.vmem [resolvable:$true] %s126_s18  ;;  %s40_s21 = int_to_ptr.vmem [resolvable:$true] %s39_s21 }
  0x4c   :  { %s1649_s24 = scalar_lea.hbm %s2252_s11, 1024 }
  0x4d   :  { %p1650_p10 = scmp.ne.s32.totalorder %s2252_s11, %s1649_s24  ;;  %p1653_p11 = scmp.lt.u32.totalorder %s1649_s24, %s2252_s11 }
  0x4f   :  { %p1655_p12 = pnand %p1653_p11, %p1650_p10 }
  0x51   :  { %1658 = shalt.err (!%p1655_p12)
}
  0x52   :  { %s1659_s8 = scalar_lea.vmem %s127_s18, 1024  ;;  %p1664_p0 = scmp.lt.s32.totalorder %s127_s18, %s127_s18 }
  0x53   :  { %p1660_p13 = scmp.ne.s32.totalorder %s127_s18, %s1659_s8  ;;  %p1665_p1 = scmp.lt.s32.totalorder %s1659_s8, %s1659_s8 }
  0x55   :  { %p1666_p2 = por %p1665_p1, %p1664_p0 }
  0x57   :  { %p1667_p3 = pnand %p1666_p2, %p1660_p13 }
  0x59   :  { %1670 = shalt.err (!%p1667_p3)
}
  0x5a   :  { %s2277_s20 = smov 4   ;;  %s2278_s29 = smov 64  }
  0x5b   :  { %132 = dma.hbm_to_vmem [thread:$0]  %s2252_s11, 1024, %s127_s18, [#allocation15], %s2278_s29, %s2278_s29, %s2277_s20  }
  0x5c   :  { %s2279_s26 = sld [smem:[#allocation30_spill]] }
  0x62   :  { %s1671_s28 = scalar_lea.hbm %s2279_s26, 128 }
  0x63   :  { %p1672_p4 = scmp.ne.s32.totalorder %s2279_s26, %s1671_s28  ;;  %p1675_p5 = scmp.lt.u32.totalorder %s1671_s28, %s2279_s26 }
  0x65   :  { %p1677_p6 = pnand %p1675_p5, %p1672_p4 }
  0x67   :  { %1680 = shalt.err (!%p1677_p6)
}
  0x68   :  { %s1681_s25 = scalar_lea.vmem %s40_s21, 128  ;;  %p1686_p8 = scmp.lt.s32.totalorder %s40_s21, %s40_s21 }
  0x69   :  { %p1682_p7 = scmp.ne.s32.totalorder %s40_s21, %s1681_s25  ;;  %p1687_p9 = scmp.lt.s32.totalorder %s1681_s25, %s1681_s25 }
  0x6b   :  { %p1688_p10 = por %p1687_p9, %p1686_p8 }
  0x6d   :  { %p1689_p11 = pnand %p1688_p10, %p1682_p7 }
  0x6f   :  { %1692 = shalt.err (!%p1689_p11)
}
  0x70   :  { %42 = dma.hbm_to_vmem [thread:$0]  %s2279_s26, 128, %s40_s21, [#allocation3]  }
  0x71   :  { %s1872_s3 = smov [#allocation7]   ;;  %s1873_s2 = smov [#allocation10]  }
  0x72   :  { %s58_s8 = sshll.u32 %s1872_s3, 4  ;;  %s82_s30 = sshll.u32 %s1873_s2, 4  ;;  %s59_s8 = int_to_ptr.vmem [resolvable:$true] %s58_s8  ;;  %s83_s30 = int_to_ptr.vmem [resolvable:$true] %s82_s30 }
  0x73   :  { %s2280_s28 = sld [smem:[#allocation32_spill]] }
  0x79   :  { %s1693_s0 = scalar_lea.hbm %s2280_s28, 1024 }
  0x7a   :  { %p1694_p12 = scmp.ne.s32.totalorder %s2280_s28, %s1693_s0  ;;  %p1697_p13 = scmp.lt.u32.totalorder %s1693_s0, %s2280_s28 }
  0x7c   :  { %p1699_p0 = pnand %p1697_p13, %p1694_p12 }
  0x7e   :  { %1702 = shalt.err (!%p1699_p0)
}
  0x7f   :  { %s1703_s21 = scalar_lea.vmem %s59_s8, 1024  ;;  %p1708_p2 = scmp.lt.s32.totalorder %s59_s8, %s59_s8 }
  0x80   :  { %p1704_p1 = scmp.ne.s32.totalorder %s59_s8, %s1703_s21  ;;  %p1709_p3 = scmp.lt.s32.totalorder %s1703_s21, %s1703_s21 }
  0x82   :  { %p1710_p4 = por %p1709_p3, %p1708_p2 }
  0x84   :  { %p1711_p5 = pnand %p1710_p4, %p1704_p1 }
  0x86   :  { %1714 = shalt.err (!%p1711_p5)
}
  0x87   :  { %64 = dma.hbm_to_vmem [thread:$0]  %s2280_s28, 1024, %s59_s8, [#allocation6], %s2278_s29, %s2278_s29, %s2277_s20  }
  0x88   :  { %s1715_s2 = scalar_lea.hbm %s2245_s4, 1024 }
  0x89   :  { %p1716_p6 = scmp.ne.s32.totalorder %s2245_s4, %s1715_s2  ;;  %p1719_p7 = scmp.lt.u32.totalorder %s1715_s2, %s2245_s4 }
  0x8b   :  { %p1721_p8 = pnand %p1719_p7, %p1716_p6 }
  0x8d   :  { %1724 = shalt.err (!%p1721_p8)
}
  0x8e   :  { %s1725_s23 = scalar_lea.vmem %s83_s30, 1024  ;;  %p1730_p10 = scmp.lt.s32.totalorder %s83_s30, %s83_s30 }
  0x8f   :  { %p1726_p9 = scmp.ne.s32.totalorder %s83_s30, %s1725_s23  ;;  %p1731_p11 = scmp.lt.s32.totalorder %s1725_s23, %s1725_s23 }
  0x91   :  { %p1732_p12 = por %p1731_p11, %p1730_p10 }
  0x93   :  { %p1733_p13 = pnand %p1732_p12, %p1726_p9 }
  0x95   :  { %1736 = shalt.err (!%p1733_p13)
}
  0x96   :  { %88 = dma.hbm_to_vmem [thread:$0]  %s2245_s4, 1024, %s83_s30, [#allocation9], %s2278_s29, %s2278_s29, %s2277_s20  }
  0x97   :  { %s1874_s24 = smov [#allocation13]   ;;  %s1875_s21 = smov [#allocation16]  }
  0x98   :  { %s114_s25 = sshll.u32 %s1874_s24, 4  ;;  %s138_s26 = sshll.u32 %s1875_s21, 4  ;;  %s115_s25 = int_to_ptr.vmem [resolvable:$true] %s114_s25  ;;  %s139_s26 = int_to_ptr.vmem [resolvable:$true] %s138_s26 }
  0x99   :  { %s1737_s3 = scalar_lea.hbm %s2251_s10, 1024 }
  0x9a   :  { %p1738_p0 = scmp.ne.s32.totalorder %s2251_s10, %s1737_s3  ;;  %p1741_p1 = scmp.lt.u32.totalorder %s1737_s3, %s2251_s10 }
  0x9c   :  { %p1743_p2 = pnand %p1741_p1, %p1738_p0 }
  0x9e   :  { %1746 = shalt.err (!%p1743_p2)
}
  0x9f   :  { %s1747_s4 = scalar_lea.vmem %s115_s25, 1024  ;;  %p1752_p4 = scmp.lt.s32.totalorder %s115_s25, %s115_s25 }
  0xa0   :  { %p1748_p3 = scmp.ne.s32.totalorder %s115_s25, %s1747_s4  ;;  %p1753_p5 = scmp.lt.s32.totalorder %s1747_s4, %s1747_s4 }
  0xa2   :  { %p1754_p6 = por %p1753_p5, %p1752_p4 }
  0xa4   :  { %p1755_p7 = pnand %p1754_p6, %p1748_p3 }
  0xa6   :  { %1758 = shalt.err (!%p1755_p7)
}
  0xa7   :  { %120 = dma.hbm_to_vmem [thread:$0]  %s2251_s10, 1024, %s115_s25, [#allocation12], %s2278_s29, %s2278_s29, %s2277_s20  }
  0xa8   :  { %s1759_s28 = scalar_lea.hbm %s2253_s12, 1024 }
  0xa9   :  { %p1760_p8 = scmp.ne.s32.totalorder %s2253_s12, %s1759_s28  ;;  %p1763_p9 = scmp.lt.u32.totalorder %s1759_s28, %s2253_s12 }
  0xab   :  { %p1765_p10 = pnand %p1763_p9, %p1760_p8 }
  0xad   :  { %1768 = shalt.err (!%p1765_p10)
}
  0xae   :  { %s1769_s3 = scalar_lea.vmem %s139_s26, 1024  ;;  %p1774_p12 = scmp.lt.s32.totalorder %s139_s26, %s139_s26 }
  0xaf   :  { %p1770_p11 = scmp.ne.s32.totalorder %s139_s26, %s1769_s3  ;;  %p1775_p13 = scmp.lt.s32.totalorder %s1769_s3, %s1769_s3 }
  0xb1   :  { %p1776_p0 = por %p1775_p13, %p1774_p12 }
  0xb3   :  { %p1777_p1 = pnand %p1776_p0, %p1770_p11 }
  0xb5   :  { %1780 = shalt.err (!%p1777_p1)
}
  0xb6   :  { %144 = dma.hbm_to_vmem [thread:$0]  %s2253_s12, 1024, %s139_s26, [#allocation15], %s2278_s29, %s2278_s29, %s2277_s20  }
  0xb7   :  { %s1876_s2 = smov [#allocation17]   ;;  %s1781_s4 = scalar_lea.hbm %s2254_s13, 1024 }
  0xb8   :  { %s150_s27 = sshll.u32 %s1876_s2, 4  ;;  %p1782_p2 = scmp.ne.s32.totalorder %s2254_s13, %s1781_s4  ;;  %s151_s27 = int_to_ptr.vmem [resolvable:$true] %s150_s27 }
  0xb9   :  { %p1785_p3 = scmp.lt.u32.totalorder %s1781_s4, %s2254_s13 }
  0xbb   :  { %p1787_p4 = pnand %p1785_p3, %p1782_p2 }
  0xbd   :  { %1790 = shalt.err (!%p1787_p4)
}
  0xbe   :  { %s1791_s28 = scalar_lea.vmem %s151_s27, 1024  ;;  %p1796_p6 = scmp.lt.s32.totalorder %s151_s27, %s151_s27 }
  0xbf   :  { %p1792_p5 = scmp.ne.s32.totalorder %s151_s27, %s1791_s28  ;;  %p1797_p7 = scmp.lt.s32.totalorder %s1791_s28, %s1791_s28 }
  0xc1   :  { %p1798_p8 = por %p1797_p7, %p1796_p6 }
  0xc3   :  { %p1799_p9 = pnand %p1798_p8, %p1792_p5 }
  0xc5   :  { %1802 = shalt.err (!%p1799_p9)
}
  0xc6   :  { %156 = dma.hbm_to_vmem [thread:$0]  %s2254_s13, 1024, %s151_s27, [#allocation18], %s2278_s29, %s2278_s29, %s2277_s20  }
  0xc7   :  { %1847 = dma.done.wait [#allocation3], 128  }
  0xc8   :  { %1848 = vsyncadd [#allocation3], 4294967168 }
  0xc9   :  { %1849 = dma.done.wait [#allocation6], 1152  }
  0xca   :  { %1850 = vsyncadd [#allocation6], 4294966144 }
  0xcb   :  { %1851 = dma.done.wait [#allocation9], 2048  }
  0xcc   :  { %1852 = vsyncadd [#allocation9], 4294965248 }
  0xcd   :  { %1853 = dma.done.wait [#allocation12], 3072  }
  0xce   :  { %1854 = vsyncadd [#allocation12], 4294964224 }
  0xcf   :  { %1855 = dma.done.wait [#allocation15], 2048  }
  0xd0   :  { %1856 = vsyncadd [#allocation15], 4294965248 }
  0xd1   :  { %1857 = dma.done.wait [#allocation18], 1024  }
  0xd2   :  { %1858 = vsyncadd [#allocation18], 4294966272  ;;  %v1877_v0 = vmov 0.0   ;;  %vm1878_vm0 = vmmov 0   ;;  %v1499_v1 = vld [vmem:[#allocation7] sm:$0xff]   ;;  %v1500_v2 = vld [vmem:[#allocation7 + $0x8] sm:$0xff]  }
  0xd3   :  { %1340 = vmatprep.subr.bf16.mxu0 %v1877_v0  ;;  %1356 = vmatprep.mubr.msk.bf16.mxu0 %vm1878_vm0, %v1877_v0  ;;  %v1501_v3 = vld [vmem:[#allocation7 + $0x10] sm:$0xff]   ;;  %v1507_v4 = vld [vmem:[#allocation8] sm:$0xff]   ;;  %v1502_v5 = vld [vmem:[#allocation7 + $0x18] sm:$0xff]   ;;  %v1879_v61 = vmov 0  }
  0xd4   :  { %1360 = vmatprep.subr.bf16.mxu1 %v1877_v0  ;;  %1376 = vmatprep.mubr.msk.bf16.mxu1 %vm1878_vm0, %v1877_v0  ;;  %v1508_v6 = vld [vmem:[#allocation8 + $0x8] sm:$0xff]   ;;  %v1503_v7 = vld [vmem:[#allocation7 + $0x20] sm:$0xff]   ;;  %v1509_v8 = vld [vmem:[#allocation8 + $0x10] sm:$0xff]  }
  0xd5   :  { %1341 = vmatpush3.bf16.msra.mxu0 %v1499_v1  ;;  %1361 = vmatpush3.bf16.msra.mxu1 %v1507_v4  ;;  %v1504_v9 = vld [vmem:[#allocation7 + $0x28] sm:$0xff]   ;;  %v1510_v10 = vld [vmem:[#allocation8 + $0x18] sm:$0xff]   ;;  %v1505_v11 = vld [vmem:[#allocation7 + $0x30] sm:$0xff]  }
  0xd6   :  { %1342 = vmatprep.subr.bf16.mxu0 %v1877_v0  ;;  %1362 = vmatprep.subr.bf16.mxu1 %v1877_v0  ;;  %v1511_v12 = vld [vmem:[#allocation8 + $0x20] sm:$0xff]   ;;  %v1506_v13 = vld [vmem:[#allocation7 + $0x38] sm:$0xff]   ;;  %v196_v14 = vld [vmem:[#allocation2] sm:$0xff] }
  0xd7   :  { %v1512_v15 = vld [vmem:[#allocation8 + $0x28] sm:$0xff]   ;;  %v197_v16 = vpack.c.bf16 %v196_v14, %v196_v14  ;;  %v1513_v17 = vld [vmem:[#allocation8 + $0x30] sm:$0xff]   ;;  %v1514_v18 = vld [vmem:[#allocation8 + $0x38] sm:$0xff]  }
  0xd8   :  { %v1515_v19 = vld [vmem:[#allocation10] sm:$0xff]   ;;  %v1516_v20 = vld [vmem:[#allocation10 + $0x8] sm:$0xff]   ;;  %v1517_v21 = vld [vmem:[#allocation10 + $0x10] sm:$0xff]  }
  0xd9   :  { %1343 = vmatpush3.bf16.msra.mxu0 %v1500_v2  ;;  %1363 = vmatpush3.bf16.msra.mxu1 %v1508_v6  ;;  %v1518_v22 = vld [vmem:[#allocation10 + $0x18] sm:$0xff]   ;;  %v1519_v23 = vld [vmem:[#allocation10 + $0x20] sm:$0xff]   ;;  %v1520_v24 = vld [vmem:[#allocation10 + $0x28] sm:$0xff]  }
  0xda   :  { %1344 = vmatprep.subr.bf16.mxu0 %v1877_v0  ;;  %1364 = vmatprep.subr.bf16.mxu1 %v1877_v0  ;;  %v1197_v25 = vld [vmem:[%s2246_s5] ss:$0 sm:$0xff]  ;;  %v1522_v35 = vld [vmem:[#allocation10 + $0x38] sm:$0xff]   ;;  %v1523_v36 = vld [vmem:[#allocation11] ss:$8 sps:$4 sm:$0xff]  }
  0xdb   :  { %v1521_v34 = vld [vmem:[#allocation10 + $0x30] sm:$0xff]   ;;  %v1525_v37 = vld [vmem:[#allocation11 + $0x4] ss:$8 sps:$4 sm:$0xff]   ;;  %v1529_v41 = vld [vmem:[#allocation11 + $0x20] ss:$8 sps:$4 sm:$0xff]  }
  0xdc   :  { %v1528_v38 = vld [vmem:[#allocation11 + $0x14] ss:$8 sps:$4 sm:$0xff]   ;;  %v1526_v39 = vld [vmem:[#allocation11 + $0x10] ss:$8 sps:$4 sm:$0xff]   ;;  %v1531_v40 = vld [vmem:[#allocation11 + $0x24] ss:$8 sps:$4 sm:$0xff]  }
  0xdd   :  { %1345 = vmatpush3.bf16.msra.mxu0 %v1501_v3  ;;  %1365 = vmatpush3.bf16.msra.mxu1 %v1509_v8  ;;  %v1534_v42 = vld [vmem:[#allocation11 + $0x34] ss:$8 sps:$4 sm:$0xff]   ;;  %v1532_v43 = vld [vmem:[#allocation11 + $0x30] ss:$8 sps:$4 sm:$0xff]   ;;  %v1537_v44 = vld [vmem:[#allocation11 + $0x44] ss:$8 sps:$4 sm:$0xff]  }
  0xde   :  { %1346 = vmatprep.subr.bf16.mxu0 %v1877_v0  ;;  %1366 = vmatprep.subr.bf16.mxu1 %v1877_v0  ;;  %v1535_v45 = vld [vmem:[#allocation11 + $0x40] ss:$8 sps:$4 sm:$0xff]   ;;  %v1540_v46 = vld [vmem:[#allocation11 + $0x54] ss:$8 sps:$4 sm:$0xff]   ;;  %v1538_v47 = vld [vmem:[#allocation11 + $0x50] ss:$8 sps:$4 sm:$0xff]  }
  0xdf   :  { %v1206_v48 = vld [vmem:[%s2247_s6] ss:$0 sm:$0xff]  ;;  %v1543_v57 = vld [vmem:[#allocation11 + $0x64] ss:$8 sps:$4 sm:$0xff]   ;;  %v1541_v58 = vld [vmem:[#allocation11 + $0x60] ss:$8 sps:$4 sm:$0xff]  }
  0xe0   :  { %v1546_v59 = vld [vmem:[#allocation11 + $0x74] ss:$8 sps:$4 sm:$0xff]   ;;  %v1544_v60 = vld [vmem:[#allocation11 + $0x70] ss:$8 sps:$4 sm:$0xff]   ;;  %v1547_v62 = vld [vmem:[#allocation13] sm:$0xff]  }
  0xe1   :  { %1347 = vmatpush3.bf16.msra.mxu0 %v1502_v5  ;;  %1367 = vmatpush3.bf16.msra.mxu1 %v1510_v10  ;;  %v1548_v63 = vld [vmem:[#allocation13 + $0x8] sm:$0xff]   ;;  %v1215_v1 = vld [vmem:[%s2248_s7] ss:$0 sm:$0xff] }
  0xe2   :  { %1348 = vmatprep.subr.bf16.mxu0 %v1877_v0  ;;  %1368 = vmatprep.subr.bf16.mxu1 %v1877_v0  ;;  %v1549_v10 = vld [vmem:[#allocation13 + $0x10] sm:$0xff]  }
  0xe3   :  { %v1553_v14 = vld [vmem:[#allocation13 + $0x30] sm:$0xff]  }
  0xe5   :  { %1349 = vmatpush3.bf16.msra.mxu0 %v1503_v7  ;;  %1369 = vmatpush3.bf16.msra.mxu1 %v1511_v12  ;;  %v1551_v12 = vld [vmem:[#allocation13 + $0x20] sm:$0xff]  }
  0xe6   :  { %1350 = vmatprep.subr.bf16.mxu0 %v1877_v0  ;;  %1370 = vmatprep.subr.bf16.mxu1 %v1877_v0 }
  0xe9   :  { %1351 = vmatpush3.bf16.msra.mxu0 %v1504_v9  ;;  %1371 = vmatpush3.bf16.msra.mxu1 %v1512_v15  ;;  %v1554_v15 = vld [vmem:[#allocation13 + $0x38] sm:$0xff]  }
  0xea   :  { %1352 = vmatprep.subr.bf16.mxu0 %v1877_v0  ;;  %1372 = vmatprep.subr.bf16.mxu1 %v1877_v0 }
  0xed   :  { %1353 = vmatpush3.bf16.msra.mxu0 %v1505_v11  ;;  %1373 = vmatpush3.bf16.msra.mxu1 %v1513_v17  ;;  %v1550_v11 = vld [vmem:[#allocation13 + $0x18] sm:$0xff]   ;;  %v1556_v17 = vld [vmem:[#allocation14 + $0x8] sm:$0xff]  }
  0xee   :  { %1354 = vmatprep.subr.bf16.mxu0 %v1877_v0  ;;  %1374 = vmatprep.subr.bf16.mxu1 %v1877_v0 }
  0xf1   :  { %1355 = vmatpush3.bf16.msra.mxu0 %v1506_v13  ;;  %1375 = vmatpush3.bf16.msra.mxu1 %v1514_v18  ;;  %v1552_v13 = vld [vmem:[#allocation13 + $0x28] sm:$0xff]   ;;  %v1557_v18 = vld [vmem:[#allocation14 + $0x10] sm:$0xff]  }
  0xf2   :  { %1380 = vmatprep.subr.bf16.mxu0 %v1877_v0  ;;  %651 = vmatprep.subr.bf16.mxu1 %v1525_v37 }
  0xf4   :  { %1357 = vmatmul.mubr.bf16.vlgmr.msra.gmra.mrb[0].mxu0 %v197_v16  ;;  %v1555_v16 = vld [vmem:[#allocation14] sm:$0xff]  }
  0xf5   :  { %1396 = vmatprep.mubr.msk.bf16.mxu0 %vm1878_vm0, %v1877_v0  ;;  %1381 = vmatpush3.bf16.msra.mxu0 %v1515_v19  ;;  %v1558_v19 = vld [vmem:[#allocation14 + $0x18] sm:$0xff]  }
  0xf6   :  { %1382 = vmatprep.subr.bf16.mxu0 %v1877_v0 }
  0xf9   :  { %1383 = vmatpush3.bf16.msra.mxu0 %v1516_v20  ;;  %v1559_v20 = vld [vmem:[#allocation14 + $0x20] sm:$0xff]  }
  0xfa   :  { %1384 = vmatprep.subr.bf16.mxu0 %v1877_v0 }
  0xfd   :  { %1385 = vmatpush3.bf16.msra.mxu0 %v1517_v21  ;;  %v1560_v21 = vld [vmem:[#allocation14 + $0x28] sm:$0xff]  }
  0xfe   :  { %1386 = vmatprep.subr.bf16.mxu0 %v1877_v0 }
 0x101   :  { %1387 = vmatpush3.bf16.msra.mxu0 %v1518_v22  ;;  %v561_v22 = vlaneseq }
 0x102   :  { %1388 = vmatprep.subr.bf16.mxu0 %v1877_v0 }
 0x105   :  { %1389 = vmatpush3.bf16.msra.mxu0 %v1519_v23  ;;  %v562_v23 = vshrl.u32 %v561_v22, 7 }
 0x106   :  { %1390 = vmatprep.subr.bf16.mxu0 %v1877_v0 }
 0x109   :  { %1391 = vmatpush3.bf16.msra.mxu0 %v1520_v24  ;;  %v563_v24 = vsub.s32 0, %v562_v23 }
 0x10a   :  { %1392 = vmatprep.subr.bf16.mxu0 %v1877_v0 }
 0x10d   :  { %1393 = vmatpush3.bf16.msra.mxu0 %v1521_v34 }
 0x10e   :  { %1394 = vmatprep.subr.bf16.mxu0 %v1877_v0 }
 0x111   :  { %1395 = vmatpush3.bf16.msra.mxu0 %v1522_v35 }
 0x112   :  { %1400 = vmatprep.subr.bf16.mxu0 %v1877_v0 }
 0x1c7   :  { %v303_v26 = vpop.f32.mrb[0].mxu0 }
 0x1c8   :  { %v304_v27 = vadd.f32 %v1197_v25, %v303_v26  ;;  %v1358_v28 = vpop.f32.mrb[1].mxu0  ;;  %v559_v25 = vld [vmem:[%s2250_s9] sm:$0x3] }
 0x1c9   :  { %v306_v29 = vpop.f32.mrb[2].mxu0  ;;  %v564_v26 = vrot.slane %v559_v25, %v563_v24 }
 0x1ca   :  { %vm309_vm1 = vcmp.gt.f32.partialorder %v304_v27, 0.0  ;;  %v310_v30 = vmul.f32 0.01, %v304_v27  ;;  %v1359_v31 = vpop.f32.mrb[3].mxu0 }
 0x1cc   :  { %v311_v32 = vsel %vm309_vm1, %v304_v27, %v310_v30  ;;  %v567_v30 = vsub.s32 1, %v562_v23 }
 0x1cd   :  { %v312_v33 = vpack.c.bf16 %v311_v32, %v311_v32 }
 0x1cf   :  { %1377 = vmatmul.mubr.bf16.vlgmr.msra.gmra.mrb[0].mxu1 %v312_v33 }
 0x1d0   :  { %652 = vmatpush1.bf16.msra.mxu1 %v1523_v36  ;;  %683 = vmatprep.mubr.bf16.mxu1 %v1879_v61  ;;  %v568_v36 = vrot.slane %v559_v25, %v567_v30 }
 0x1d1   :  { %653 = vmatprep.subr.bf16.mxu1 %v1528_v38 }
 0x1d4   :  { %654 = vmatpush1.bf16.msra.mxu1 %v1526_v39 }
 0x1d5   :  { %655 = vmatprep.subr.bf16.mxu1 %v1531_v40  ;;  %v702_v40 = vld [vmem:[#allocation5] sm:$0xff] }
 0x1d8   :  { %656 = vmatpush1.bf16.msra.mxu1 %v1529_v41 }
 0x1d9   :  { %657 = vmatprep.subr.bf16.mxu1 %v1534_v42 }
 0x1dc   :  { %658 = vmatpush1.bf16.msra.mxu1 %v1532_v43 }
 0x1dd   :  { %659 = vmatprep.subr.bf16.mxu1 %v1537_v44 }
 0x1e0   :  { %660 = vmatpush1.bf16.msra.mxu1 %v1535_v45 }
 0x1e1   :  { %661 = vmatprep.subr.bf16.mxu1 %v1540_v46 }
 0x1e4   :  { %662 = vmatpush1.bf16.msra.mxu1 %v1538_v47 }
 0x1e5   :  { %663 = vmatprep.subr.bf16.mxu1 %v1543_v57 }
 0x1e8   :  { %664 = vmatpush1.bf16.msra.mxu1 %v1541_v58 }
 0x1e9   :  { %665 = vmatprep.subr.bf16.mxu1 %v1546_v59 }
 0x1ec   :  { %666 = vmatpush1.bf16.msra.mxu1 %v1544_v60 }
 0x1ed   :  { %1420 = vmatprep.subr.bf16.mxu1 %v1877_v0 }
 0x2a2   :  { %v418_v49 = vpop.f32.mrb[0].mxu1 }
 0x2a3   :  { %v419_v50 = vadd.f32 %v1206_v48, %v418_v49  ;;  %v1378_v51 = vpop.f32.mrb[1].mxu1  ;;  %v1561_v48 = vld [vmem:[#allocation14 + $0x30] sm:$0xff]   ;;  %v1562_v49 = vld [vmem:[#allocation14 + $0x38] sm:$0xff]  }
 0x2a4   :  { %v421_v52 = vpop.f32.mrb[2].mxu1  ;;  %v1564_v51 = vld [vmem:[#allocation16 + $0x8] sm:$0xff]  }
 0x2a5   :  { %vm424_vm2 = vcmp.gt.f32.partialorder %v419_v50, 0.0  ;;  %v425_v53 = vmul.f32 0.01, %v419_v50  ;;  %v1379_v54 = vpop.f32.mrb[3].mxu1  ;;  %v1565_v52 = vld [vmem:[#allocation16 + $0x10] sm:$0xff]  }
 0x2a6   :  { %v1567_v54 = vld [vmem:[#allocation16 + $0x20] sm:$0xff]  }
 0x2a7   :  { %v426_v55 = vsel %vm424_vm2, %v419_v50, %v425_v53  ;;  %v1563_v50 = vld [vmem:[#allocation16] sm:$0xff]   ;;  %v1566_v53 = vld [vmem:[#allocation16 + $0x18] sm:$0xff]  }
 0x2a8   :  { %v427_v56 = vpack.c.bf16 %v426_v55, %v426_v55  ;;  %v1568_v55 = vld [vmem:[#allocation16 + $0x28] sm:$0xff]  }
 0x2aa   :  { %1397 = vmatmul.mubr.bf16.vlgmr.msra.gmra.mrb[4].mxu0 %v427_v56  ;;  %v1241_v56 = vld [vmem:[%s2255_s14] ss:$0 sm:$0xff] }
 0x2ab   :  { %1416 = vmatprep.mubr.msk.bf16.mxu0 %vm1878_vm0, %v1877_v0  ;;  %1401 = vmatpush3.bf16.msra.mxu0 %v1547_v62 }
 0x2ac   :  { %1402 = vmatprep.subr.bf16.mxu0 %v1877_v0 }
 0x2af   :  { %1403 = vmatpush3.bf16.msra.mxu0 %v1548_v63 }
 0x2b0   :  { %1404 = vmatprep.subr.bf16.mxu0 %v1877_v0 }
 0x2b3   :  { %1405 = vmatpush3.bf16.msra.mxu0 %v1549_v10  ;;  %v1250_v10 = vld [vmem:[%s2256_s15] ss:$0 sm:$0xff]  ;;  %s1880_s15 = smov [#allocation20]  }
 0x2b4   :  { %1406 = vmatprep.subr.bf16.mxu0 %v1877_v0  ;;  %s1179_s25 = sshll.u32 %s1880_s15, 4  ;;  %s1180_s25 = int_to_ptr.vmem [resolvable:$true] %s1179_s25 }
 0x2b5   :  { %s1803_s2 = scalar_lea.vmem %s1180_s25, 128  ;;  %p1808_p11 = scmp.lt.s32.totalorder %s1180_s25, %s1180_s25 }
 0x2b6   :  { %p1804_p10 = scmp.ne.s32.totalorder %s1180_s25, %s1803_s2  ;;  %p1809_p12 = scmp.lt.s32.totalorder %s1803_s2, %s1803_s2 }
 0x2b7   :  { %1407 = vmatpush3.bf16.msra.mxu0 %v1550_v11 }
 0x2b8   :  { %1408 = vmatprep.subr.bf16.mxu0 %v1877_v0  ;;  %p1810_p13 = por %p1809_p12, %p1808_p11 }
 0x2ba   :  { %p1811_p0 = pnand %p1810_p13, %p1804_p10 }
 0x2bb   :  { %1409 = vmatpush3.bf16.msra.mxu0 %v1551_v12 }
 0x2bc   :  { %1410 = vmatprep.subr.bf16.mxu0 %v1877_v0 }
 0x2bf   :  { %1411 = vmatpush3.bf16.msra.mxu0 %v1552_v13 }
 0x2c0   :  { %1412 = vmatprep.subr.bf16.mxu0 %v1877_v0 }
 0x2c3   :  { %1413 = vmatpush3.bf16.msra.mxu0 %v1553_v14 }
 0x2c4   :  { %1414 = vmatprep.subr.bf16.mxu0 %v1877_v0 }
 0x2c7   :  { %1415 = vmatpush3.bf16.msra.mxu0 %v1554_v15 }
 0x2c8   :  { %1440 = vmatprep.subr.bf16.mxu0 %v1877_v0 }
 0x37d   :  { %v533_v2 = vpop.f32.mrb[4].mxu0 }
 0x37e   :  { %v534_v3 = vadd.f32 %v1215_v1, %v533_v2  ;;  %v1398_v4 = vpop.f32.mrb[5].mxu0  ;;  %v1569_v2 = vld [vmem:[#allocation16 + $0x30] sm:$0xff]  }
 0x37f   :  { %v536_v5 = vpop.f32.mrb[6].mxu0  ;;  %v1571_v4 = vld [vmem:[#allocation17] sm:$0xff]  }
 0x380   :  { %vm539_vm3 = vcmp.gt.f32.partialorder %v534_v3, 0.0  ;;  %v540_v6 = vmul.f32 0.01, %v534_v3  ;;  %v1399_v7 = vpop.f32.mrb[7].mxu0  ;;  %v1572_v5 = vld [vmem:[#allocation17 + $0x8] sm:$0xff]  }
 0x381   :  { %v1574_v7 = vld [vmem:[#allocation17 + $0x18] sm:$0xff]  }
 0x382   :  { %v541_v8 = vsel %vm539_vm3, %v534_v3, %v540_v6  ;;  %v1570_v3 = vld [vmem:[#allocation16 + $0x38] sm:$0xff]   ;;  %v1573_v6 = vld [vmem:[#allocation17 + $0x10] sm:$0xff]  }
 0x383   :  { %v542_v9 = vpack.c.bf16 %v541_v8, %v541_v8  ;;  %v1575_v8 = vld [vmem:[#allocation17 + $0x20] sm:$0xff]  }
 0x385   :  { %684 = vmatmul.mubr.bf16.vlgmr.msra.gmra.mrb[4].mxu1 %v542_v9  ;;  %v1576_v9 = vld [vmem:[#allocation17 + $0x28] sm:$0xff]  }
 0x386   :  { %1436 = vmatprep.mubr.msk.bf16.mxu1 %vm1878_vm0, %v1877_v0  ;;  %1421 = vmatpush3.bf16.msra.mxu1 %v1555_v16 }
 0x387   :  { %1422 = vmatprep.subr.bf16.mxu1 %v1877_v0 }
 0x38a   :  { %1423 = vmatpush3.bf16.msra.mxu1 %v1556_v17 }
 0x38b   :  { %1424 = vmatprep.subr.bf16.mxu1 %v1877_v0 }
 0x38e   :  { %1425 = vmatpush3.bf16.msra.mxu1 %v1557_v18 }
 0x38f   :  { %1426 = vmatprep.subr.bf16.mxu1 %v1877_v0 }
 0x392   :  { %1427 = vmatpush3.bf16.msra.mxu1 %v1558_v19  ;;  %v1577_v19 = vld [vmem:[#allocation17 + $0x30] sm:$0xff]  }
 0x393   :  { %1428 = vmatprep.subr.bf16.mxu1 %v1877_v0 }
 0x396   :  { %1429 = vmatpush3.bf16.msra.mxu1 %v1559_v20  ;;  %v1578_v20 = vld [vmem:[#allocation17 + $0x38] sm:$0xff]  }
 0x397   :  { %1430 = vmatprep.subr.bf16.mxu1 %v1877_v0 }
 0x39a   :  { %1431 = vmatpush3.bf16.msra.mxu1 %v1560_v21  ;;  %v1259_v21 = vld [vmem:[%s2257_s16] ss:$0 sm:$0xff] }
 0x39b   :  { %1432 = vmatprep.subr.bf16.mxu1 %v1877_v0 }
 0x39e   :  { %1433 = vmatpush3.bf16.msra.mxu1 %v1561_v48 }
 0x39f   :  { %1434 = vmatprep.subr.bf16.mxu1 %v1877_v0 }
 0x3a2   :  { %1435 = vmatpush3.bf16.msra.mxu1 %v1562_v49 }
 0x3a3   :  { %1460 = vmatprep.subr.bf16.mxu1 %v1877_v0 }
 0x458   :  { %v685_v27 = vpop.f32.mrb[4].mxu1 }
 0x459   :  { %v686_v28 = vadd.f32 %v685_v27, %v564_v26  ;;  %v687_v29 = vpop.f32.mrb[5].mxu1 }
 0x45a   :  { %v689_v31 = vpop.f32.mrb[6].mxu1  ;;  %v688_v37 = vadd.f32 %v687_v29, %v568_v36 }
 0x45b   :  { %v692_v32 = vmul.f32 0.5, %v686_v28  ;;  %v695_v33 = vmul.f32 1.442695, %v686_v28  ;;  %v690_v34 = vpop.f32.mrb[7].mxu1 }
 0x45c   :  { %v697_v38 = vmul.f32 %v688_v37, %v688_v37 }
 0x45d   :  { %v693_v35 = vmul.f32 1.442695, %v692_v32  ;;  %1579 = vpow2.f32 %v695_v33 }
 0x45f   :  { %1581 = vpow2.f32 %v693_v35 }
 0x467   :  { %v1580_v39 = vpop.eup %1579 }
 0x468   :  { %v698_v41 = vadd.f32 %v1580_v39, %v697_v38 }
 0x469   :  { %v1582_v42 = vpop.eup %1581 }
 0x46a   :  { %v1240_v43 = vadd.f32 -1.0, %v698_v41  ;;  %v703_v44 = vmul.f32 %v1582_v42, %v702_v40 }
 0x46c   :  { %v704_v45 = vadd.f32 %v703_v44, %v688_v37  ;;  %v700_v46 = vsub.f32 %v1240_v43, %v686_v28 }
 0x46e   :  { %v705_v47 = vpack.c.bf16 %v704_v45, %v704_v45  ;;  %701 = vst [vmem:[#allocation20] sm:$0xff] %v700_v46 }
 0x470   :  { %1417 = vmatmul.mubr.bf16.vlgmr.msra.gmra.mrb[8].mxu0 %v705_v47 }
 0x471   :  { %1456 = vmatprep.mubr.msk.bf16.mxu0 %vm1878_vm0, %v1877_v0  ;;  %1441 = vmatpush3.bf16.msra.mxu0 %v1563_v50 }
 0x472   :  { %1442 = vmatprep.subr.bf16.mxu0 %v1877_v0 }
 0x475   :  { %1443 = vmatpush3.bf16.msra.mxu0 %v1564_v51 }
 0x476   :  { %1444 = vmatprep.subr.bf16.mxu0 %v1877_v0 }
 0x479   :  { %1445 = vmatpush3.bf16.msra.mxu0 %v1565_v52 }
 0x47a   :  { %1446 = vmatprep.subr.bf16.mxu0 %v1877_v0 }
 0x47d   :  { %1447 = vmatpush3.bf16.msra.mxu0 %v1566_v53 }
 0x47e   :  { %1448 = vmatprep.subr.bf16.mxu0 %v1877_v0 }
 0x481   :  { %1449 = vmatpush3.bf16.msra.mxu0 %v1567_v54 }
 0x482   :  { %1450 = vmatprep.subr.bf16.mxu0 %v1877_v0 }
 0x485   :  { %1451 = vmatpush3.bf16.msra.mxu0 %v1568_v55 }
 0x486   :  { %1452 = vmatprep.subr.bf16.mxu0 %v1877_v0 }
 0x489   :  { %1453 = vmatpush3.bf16.msra.mxu0 %v1569_v2 }
 0x48a   :  { %1454 = vmatprep.subr.bf16.mxu0 %v1877_v0 }
 0x48d   :  { %1455 = vmatpush3.bf16.msra.mxu0 %v1570_v3 }
 0x543   :  { %v811_v57 = vpop.f32.mrb[8].mxu0 }
 0x544   :  { %v812_v58 = vadd.f32 %v1241_v56, %v811_v57  ;;  %v1418_v59 = vpop.f32.mrb[9].mxu0 }
 0x545   :  { %v814_v60 = vpop.f32.mrb[10].mxu0 }
 0x546   :  { %vm817_vm4 = vcmp.gt.f32.partialorder %v812_v58, 0.0  ;;  %v818_v61 = vmul.f32 0.01, %v812_v58  ;;  %v1419_v62 = vpop.f32.mrb[11].mxu0 }
 0x548   :  { %v819_v63 = vsel %vm817_vm4, %v812_v58, %v818_v61 }
 0x549   :  { %v820_v1 = vpack.c.bf16 %v819_v63, %v819_v63 }
 0x54b   :  { %1437 = vmatmul.mubr.bf16.vlgmr.msra.gmra.mrb[8].mxu1 %v820_v1 }
 0x54c   :  { %1476 = vmatprep.mubr.msk.bf16.mxu1 %vm1878_vm0, %v1877_v0  ;;  %1461 = vmatpush3.bf16.msra.mxu1 %v1571_v4 }
 0x54d   :  { %1462 = vmatprep.subr.bf16.mxu1 %v1877_v0 }
 0x550   :  { %1463 = vmatpush3.bf16.msra.mxu1 %v1572_v5 }
 0x551   :  { %1464 = vmatprep.subr.bf16.mxu1 %v1877_v0 }
 0x554   :  { %1465 = vmatpush3.bf16.msra.mxu1 %v1573_v6 }
 0x555   :  { %1466 = vmatprep.subr.bf16.mxu1 %v1877_v0 }
 0x558   :  { %1467 = vmatpush3.bf16.msra.mxu1 %v1574_v7 }
 0x559   :  { %1468 = vmatprep.subr.bf16.mxu1 %v1877_v0 }
 0x55c   :  { %1469 = vmatpush3.bf16.msra.mxu1 %v1575_v8 }
 0x55d   :  { %1470 = vmatprep.subr.bf16.mxu1 %v1877_v0 }
 0x560   :  { %1471 = vmatpush3.bf16.msra.mxu1 %v1576_v9 }
 0x561   :  { %1472 = vmatprep.subr.bf16.mxu1 %v1877_v0 }
 0x564   :  { %1473 = vmatpush3.bf16.msra.mxu1 %v1577_v19 }
 0x565   :  { %1474 = vmatprep.subr.bf16.mxu1 %v1877_v0 }
 0x568   :  { %1475 = vmatpush3.bf16.msra.mxu1 %v1578_v20 }
 0x61e   :  { %v926_v11 = vpop.f32.mrb[8].mxu1 }
 0x61f   :  { %v927_v12 = vadd.f32 %v1250_v10, %v926_v11  ;;  %v1438_v13 = vpop.f32.mrb[9].mxu1 }
 0x620   :  { %v929_v14 = vpop.f32.mrb[10].mxu1 }
 0x621   :  { %vm932_vm5 = vcmp.gt.f32.partialorder %v927_v12, 0.0  ;;  %v933_v15 = vmul.f32 0.01, %v927_v12  ;;  %v1439_v16 = vpop.f32.mrb[11].mxu1 }
 0x623   :  { %v934_v17 = vsel %vm932_vm5, %v927_v12, %v933_v15 }
 0x624   :  { %v935_v18 = vpack.c.bf16 %v934_v17, %v934_v17 }
 0x626   :  { %1457 = vmatmul.mubr.bf16.vlgmr.msra.gmra.mrb[12].mxu0 %v935_v18 }
 0x6f9   :  { %v1041_v22 = vpop.f32.mrb[12].mxu0 }
 0x6fa   :  { %v1042_v23 = vadd.f32 %v1259_v21, %v1041_v22  ;;  %v1458_v24 = vpop.f32.mrb[13].mxu0 }
 0x6fb   :  { %v1044_v25 = vpop.f32.mrb[14].mxu0 }
 0x6fc   :  { %vm1047_vm6 = vcmp.gt.f32.partialorder %v1042_v23, 0.0  ;;  %v1048_v26 = vmul.f32 0.01, %v1042_v23  ;;  %v1459_v27 = vpop.f32.mrb[15].mxu0 }
 0x6fe   :  { %v1049_v28 = vsel %vm1047_vm6, %v1042_v23, %v1048_v26 }
 0x6ff   :  { %v1050_v29 = vpack.c.bf16 %v1049_v28, %v1049_v28 }
 0x701   :  { %1477 = vmatmul.mubr.bf16.vlgmr.msra.gmra.mrb[12].mxu1 %v1050_v29 }
 0x702   :  { %1814 = shalt.err (!%p1811_p0)
}
 0x703   :  { %s1815_s1 = scalar_lea.hbm %s2260_s19, 128 }
 0x704   :  { %p1816_p1 = scmp.ne.s32.totalorder %s2260_s19, %s1815_s1  ;;  %p1819_p2 = scmp.lt.u32.totalorder %s1815_s1, %s2260_s19 }
 0x706   :  { %p1821_p3 = pnand %p1819_p2, %p1816_p1 }
 0x708   :  { %1824 = shalt.err (!%p1821_p3)
}
 0x709   :  { %1182 = dma.vmem_to_hbm [thread:$0]  %s1180_s25, 128, %s2260_s19, [#allocation21]   ;;  %v1268_v0 = vld [vmem:[%s2258_s17] ss:$0 sm:$0xff] }
 0x70a   :  { %s1881_s26 = smov [#allocation19]  }
 0x70b   :  { %s1169_s13 = sshll.u32 %s1881_s26, 4  ;;  %s1170_s13 = int_to_ptr.vmem [resolvable:$true] %s1169_s13 }
 0x70c   :  { %s1825_s20 = scalar_lea.vmem %s1170_s13, 128  ;;  %p1830_p5 = scmp.lt.s32.totalorder %s1170_s13, %s1170_s13 }
 0x70d   :  { %p1826_p4 = scmp.ne.s32.totalorder %s1170_s13, %s1825_s20  ;;  %p1831_p6 = scmp.lt.s32.totalorder %s1825_s20, %s1825_s20 }
 0x70f   :  { %p1832_p7 = por %p1831_p6, %p1830_p5 }
 0x711   :  { %p1833_p8 = pnand %p1832_p7, %p1826_p4 }
 0x7d4   :  { %v1156_v30 = vpop.f32.mrb[12].mxu1 }
 0x7d5   :  { %v1157_v31 = vadd.f32 %v1268_v0, %v1156_v30  ;;  %v1478_v32 = vpop.f32.mrb[13].mxu1 }
 0x7d6   :  { %v1159_v33 = vpop.f32.mrb[14].mxu1 }
 0x7d7   :  { %1162 = vst [vmem:[#allocation19] sm:$0xff] %v1157_v31  ;;  %v1479_v34 = vpop.f32.mrb[15].mxu1 }
 0x7d8   :  { %1836 = shalt.err (!%p1833_p8)
}
 0x7d9   :  { %s2281_s29 = sld [smem:[#allocation34_spill]] }
 0x7df   :  { %s1837_s17 = scalar_lea.hbm %s2281_s29, 128 }
 0x7e0   :  { %p1838_p9 = scmp.ne.s32.totalorder %s2281_s29, %s1837_s17  ;;  %p1841_p10 = scmp.lt.u32.totalorder %s1837_s17, %s2281_s29 }
 0x7e2   :  { %p1843_p11 = pnand %p1841_p10, %p1838_p9 }
 0x7e4   :  { %1846 = shalt.err (!%p1843_p11)
}
 0x7e5   :  { %1172 = dma.vmem_to_hbm [thread:$0]  %s1170_s13, 128, %s2281_s29, [#allocation4]  }
 0x7e6   :  { %1859 = dma.done.wait [#allocation4], 128  }
 0x7e7   :  { %1860 = vsyncadd [#allocation4], 4294967168 }
 0x7e8   :  { %1861 = dma.done.wait [#allocation21], 128  }
 0x7e9   :  { %1862 = vsyncadd [#allocation21], 4294967168 }
 0x7ea   :  { %1189 = vsyncpa [#allocation3], 1 }
 0x7eb   :  { %1190 = vsyncpa [#allocation6], 1 }
 0x7ec   :  { %1191 = vsyncpa [#allocation9], 1 }
 0x7ed   :  { %1192 = vsyncpa [#allocation12], 1 }
 0x7ee   :  { %1193 = vsyncpa [#allocation15], 1 }
 0x7ef   :  { %1194 = vsyncpa [#allocation18], 1 }
 0x7f0   :  { %1195 = vsyncpa [#allocation4], 1 }
 0x7f1   :  { %1196 = vsyncpa [#allocation21], 1 }

</bundles_post_ra>
